<compile_context>
chip_gen: v7x
topology: tpu7x:2x2x1
jax: 0.10.0
libtpu: 0.0.40
codegen_flags: <defaults>
</compile_context>

<pallas_src>
from functools import partial

import jax
import jax.numpy as jnp
from jax import lax
from jax.experimental import pallas as pl
from jax.experimental.pallas import tpu as pltpu


def _round_up(a: int, b: int) -> int:
    return (a + b - 1) // b * b


def _hash_u32(x, seed):
    """lowbias32-style integer hash -> uniform uint32 from (index, seed)."""
    h = x * jnp.uint32(0x9E3779B1) + seed
    h = h ^ (h >> 16)
    h = h * jnp.uint32(0x7FEB352D)
    h = h ^ (h >> 15)
    h = h * jnp.uint32(0x846CA68B)
    h = h ^ (h >> 16)
    return h


def _act_dropout_kernel(seed_ref, x_ref, o_ref, *, p, filterwise, total_cols):
    """ReLU + dropout over one (BR, BC) VMEM tile (native dtype, no f32 upcast)."""
    br, bc = x_ref.shape
    x = x_ref[...]
    act = jnp.maximum(x, jnp.zeros((), x.dtype))  # ReLU on the VPU, native dtype

    if p <= 0.0:
        o_ref[...] = act
        return
    if p >= 1.0:
        o_ref[...] = jnp.zeros_like(act)
        return

    seed = seed_ref[0].astype(jnp.uint32)
    row0 = (pl.program_id(0) * br).astype(jnp.uint32)
    # Full 32-bit threshold resolution (drop iff hash < p * 2^32).
    threshold = jnp.uint32(min(int(round(p * 2.0 ** 32)), 2 ** 32 - 1))

    if filterwise:
        # dropout2d: one decision per global (n, c) row; only a (BR, 1) hash is
        # computed, and it is consistent across any column tiling.
        rows = lax.broadcasted_iota(jnp.uint32, (br, 1), 0) + row0
        keep = _hash_u32(rows, seed) >= threshold            # (BR, 1), broadcasts below
    else:
        col0 = (pl.program_id(1) * bc).astype(jnp.uint32)
        rows = lax.broadcasted_iota(jnp.uint32, (br, bc), 0) + row0
        cols = lax.broadcasted_iota(jnp.uint32, (br, bc), 1) + col0
        idx = rows * jnp.uint32(total_cols) + cols           # global element index
        keep = _hash_u32(idx, seed) >= threshold

    scale = jnp.array(1.0 / (1.0 - p), dtype=x.dtype)
    o_ref[...] = jnp.where(keep, act * scale, jnp.zeros((), x.dtype))


def activation_dropout(x, seed, *, dropout_probability, use_filterwise_dropout):
    """JAX wrapper mirroring ActivationDropout.forward (activation=ReLU).

    Args:
        x: NCHW input (float32 / bfloat16).
        seed: integer PRNG seed (fresh seed per call -> fresh dropout mask).
    Returns:
        Tensor with the same shape/dtype as x.
    """
    N, C, H, W = x.shape
    rows, cols = N * C, H * W
    dtype = x.dtype
    itemsize = jnp.dtype(dtype).itemsize
    row_mult = max(8, 32 // itemsize)  # (8,128) tiles for f32, (16,128) for bf16
    LANE = 128

    # Lane-dense columns: pad H*W up to a multiple of 128; tile if very wide.
    cols_p = _round_up(cols, LANE)
    if cols_p <= 4096:
        bc = cols_p
    else:
        bc = 2048
        cols_p = _round_up(cols_p, bc)

    # Row tile targeting ~2 MiB per block (4 live buffers stay well under the
    # default scoped-VMEM limit on v5e/v6e and under v7x's 64 MiB VMEM).
    target_rows = max(row_mult, (2 * 1024 * 1024 // itemsize) // bc)
    target_rows = (target_rows // row_mult) * row_mult
    rows_p = _round_up(rows, row_mult)
    br = min(rows_p, target_rows)
    rows_p = _round_up(rows_p, br)

    x2 = x.reshape(rows, cols)
    if (rows_p, cols_p) != (rows, cols):
        x2 = jnp.pad(x2, ((0, rows_p - rows), (0, cols_p - cols)))

    seed_arr = jnp.asarray([int(seed) & 0x7FFFFFFF], dtype=jnp.int32)
    kernel = partial(
        _act_dropout_kernel,
        p=float(dropout_probability),
        filterwise=bool(use_filterwise_dropout),
        total_cols=cols_p,
    )

    out2 = pl.pallas_call(
        kernel,
        out_shape=jax.ShapeDtypeStruct((rows_p, cols_p), dtype),
        grid=(rows_p // br, cols_p // bc),
        in_specs=[
            pl.BlockSpec(memory_space=pltpu.MemorySpace.SMEM),   # seed scalar
            pl.BlockSpec((br, bc), lambda i, j: (i, j)),         # input tile
        ],
        out_specs=pl.BlockSpec((br, bc), lambda i, j: (i, j)),
        compiler_params=pltpu.CompilerParams(
            dimension_semantics=("parallel", "parallel")),       # megacore sharding on v7x
    )(seed_arr, x2)

    out2 = out2[:rows, :cols]
    return out2.reshape(N, C, H, W)


if __name__ == "__main__":
    key = jax.random.PRNGKey(0)
    x = jax.random.normal(key, (2, 4, 16, 16), dtype=jnp.float32)

    # Element-wise dropout variant (use_filterwise_dropout=False).
    y_elem = activation_dropout(
        x, seed=123, dropout_probability=0.5, use_filterwise_dropout=False
    )
    y_elem = jax.block_until_ready(y_elem)

    # Filter-wise (dropout2d) variant (use_filterwise_dropout=True).
    y_filt = activation_dropout(
        x, seed=456, dropout_probability=0.5, use_filterwise_dropout=True
    )
    y_filt = jax.block_until_ready(y_filt)

    # Sanity checks (deterministic -- no statistical flakiness).
    assert y_elem.shape == x.shape and y_filt.shape == x.shape
    # ReLU + dropout output is never negative.
    assert bool(jnp.all(y_elem >= 0)) and bool(jnp.all(y_filt >= 0))

    relu2 = 2.0 * jnp.maximum(x, 0.0)  # kept elements scale = 1/(1-0.5) = 2
    # Element-wise: every output is either 0 (dropped) or 2*relu(x) (kept).
    ok_elem = (jnp.abs(y_elem) < 1e-6) | (jnp.abs(y_elem - relu2) < 1e-5)
    assert bool(jnp.all(ok_elem))
    # Filter-wise: each (n, c) channel is either entirely zero or exactly 2*relu(x).
    yf = y_filt.reshape(2 * 4, -1)
    r2 = relu2.reshape(2 * 4, -1)
    kept_rows = jnp.any(yf != 0, axis=-1)
    diff = jnp.abs(yf - r2)
    assert bool(jnp.all(jnp.where(kept_rows[:, None], diff, 0.0) < 1e-5))

    print("KERNEL_OK")
</pallas_src>

<mosaic_0001>
module attributes {stable_mosaic.version = 11 : i64} {
  func.func @_act_dropout_kernel(%arg0: i32, %arg1: i32, %arg2: memref<1xi32, #tpu.memory_space<smem>>, %arg3: memref<8x256xf32, #tpu.memory_space<vmem>>, %arg4: memref<8x256xf32, #tpu.memory_space<vmem>>) attributes {dimension_semantics = [#tpu.dimension_semantics<parallel>, #tpu.dimension_semantics<parallel>], iteration_bounds = array<i64: 1, 1>, scalar_prefetch = 0 : i64, scratch_operands = 0 : i64, tpu.core_type = #tpu.core_type<tc>, window_params = [{transform_indices = @transform_0, window_bounds = array<i64: 1>}, {transform_indices = @transform_1, window_bounds = array<i64: 8, 256>}, {transform_indices = @transform_2, window_bounds = array<i64: 8, 256>}]} {
    %c0 = arith.constant 0 : index
    %c0_0 = arith.constant 0 : index
    %0 = vector.load %arg3[%c0, %c0_0] : memref<8x256xf32, #tpu.memory_space<vmem>>, vector<8x256xf32>
    %cst = arith.constant 0.000000e+00 : f32
    %1 = vector.broadcast %cst : f32 to vector<8x256xf32>
    %2 = arith.maximumf %0, %1 : vector<8x256xf32>
    %c0_1 = arith.constant 0 : index
    %3 = memref.load %arg2[%c0_1] : memref<1xi32, #tpu.memory_space<smem>>
    %c8_i32 = arith.constant 8 : i32
    %4 = arith.muli %arg0, %c8_i32 : i32
    %c256_i32 = arith.constant 256 : i32
    %5 = arith.muli %arg1, %c256_i32 : i32
    %6 = tpu.iota {dimensions = array<i32: 0>} : vector<8x256xi32>
    %7 = vector.broadcast %4 : i32 to vector<8x256xi32>
    %8 = arith.addi %6, %7 : vector<8x256xi32>
    %9 = tpu.iota {dimensions = array<i32: 1>} : vector<8x256xi32>
    %10 = vector.broadcast %5 : i32 to vector<8x256xi32>
    %11 = arith.addi %9, %10 : vector<8x256xi32>
    %c256_i32_2 = arith.constant 256 : i32
    %12 = vector.broadcast %c256_i32_2 : i32 to vector<8x256xi32>
    %13 = arith.muli %8, %12 : vector<8x256xi32>
    %14 = arith.addi %13, %11 : vector<8x256xi32>
    %c-1640531535_i32 = arith.constant -1640531535 : i32
    %15 = vector.broadcast %c-1640531535_i32 : i32 to vector<8x256xi32>
    %16 = arith.muli %14, %15 : vector<8x256xi32>
    %17 = vector.broadcast %3 : i32 to vector<8x256xi32>
    %18 = arith.addi %16, %17 : vector<8x256xi32>
    %c16_i32 = arith.constant 16 : i32
    %19 = vector.broadcast %c16_i32 : i32 to vector<8x256xi32>
    %20 = arith.shrui %18, %19 : vector<8x256xi32>
    %21 = arith.xori %18, %20 : vector<8x256xi32>
    %c2146121005_i32 = arith.constant 2146121005 : i32
    %22 = vector.broadcast %c2146121005_i32 : i32 to vector<8x256xi32>
    %23 = arith.muli %21, %22 : vector<8x256xi32>
    %c15_i32 = arith.constant 15 : i32
    %24 = vector.broadcast %c15_i32 : i32 to vector<8x256xi32>
    %25 = arith.shrui %23, %24 : vector<8x256xi32>
    %26 = arith.xori %23, %25 : vector<8x256xi32>
    %c-2073254261_i32 = arith.constant -2073254261 : i32
    %27 = vector.broadcast %c-2073254261_i32 : i32 to vector<8x256xi32>
    %28 = arith.muli %26, %27 : vector<8x256xi32>
    %c16_i32_3 = arith.constant 16 : i32
    %29 = vector.broadcast %c16_i32_3 : i32 to vector<8x256xi32>
    %30 = arith.shrui %28, %29 : vector<8x256xi32>
    %31 = arith.xori %28, %30 : vector<8x256xi32>
    %c-2147483648_i32 = arith.constant -2147483648 : i32
    %32 = vector.broadcast %c-2147483648_i32 : i32 to vector<8x256xi32>
    %33 = arith.cmpi uge, %31, %32 : vector<8x256xi32>
    %cst_4 = arith.constant 2.000000e+00 : f32
    %34 = vector.broadcast %cst_4 : f32 to vector<8x256xf32>
    %35 = arith.mulf %2, %34 : vector<8x256xf32>
    %cst_5 = arith.constant 0.000000e+00 : f32
    %36 = vector.broadcast %cst_5 : f32 to vector<8x256xf32>
    %37 = arith.select %33, %35, %36 : vector<8x256xi1>, vector<8x256xf32>
    %c0_6 = arith.constant 0 : index
    %c0_7 = arith.constant 0 : index
    %38 = vector.load %arg4[%c0_6, %c0_7] : memref<8x256xf32, #tpu.memory_space<vmem>>, vector<8x256xf32>
    tpu.vector_store %arg4[%c0_6, %c0_7], %37 {strides = array<i32>} : memref<8x256xf32, #tpu.memory_space<vmem>>, vector<8x256xf32>,
    return
  }
  func.func @transform_0(%arg0: i32, %arg1: i32) -> i32 {
    %c0_i32 = arith.constant 0 : i32
    %c0_i32_0 = arith.constant 0 : i32
    return %c0_i32 : i32
  }
  func.func @transform_1(%arg0: i32, %arg1: i32) -> (i32, i32) {
    %c0_i32 = arith.constant 0 : i32
    return %arg0, %arg1 : i32, i32
  }
  func.func @transform_2(%arg0: i32, %arg1: i32) -> (i32, i32) {
    %c0_i32 = arith.constant 0 : i32
    return %arg0, %arg1 : i32, i32
  }
}

</mosaic_0001>

<bundles_post_ra>
// kernel: tpu_custom_call.1
= control target key start
LH: loop header
LB: loop body
LE: loop exit
PB: predicated region body
PF: predicated region fallthrough
CT: control target
= control target key end

     0   :  { %8 = vsyncpa [#allocation4], 0  ;;  %s183_s0 = inlined_call_operand.<no memory space> [shape: s32[1], index: 0, kind: input, shape index: {}]   ;;  %s184_s1 = inlined_call_operand.hbm [shape: f32[8,256], index: 1, kind: input, shape index: {}]   ;;  %s185_s2 = inlined_call_operand.hbm [shape: f32[8,256], index: 2, kind: output, shape index: {}]  }
   0x1   :  { %9 = vsyncpa [#allocation5], 0  ;;  %s139_s9 = smov [#allocation3]   ;;  %s91_s13 = scalar_lea.hbm %s184_s1, 256 }
   0x2   :  { %s18_s10 = sshll.u32 %s139_s9, 4  ;;  %p92_p0 = scmp.ne.s32.totalorder %s184_s1, %s91_s13  ;;  %s19_s10 = int_to_ptr.vmem [resolvable:$true] %s18_s10 }
   0x3   :  { %p95_p1 = scmp.lt.u32.totalorder %s91_s13, %s184_s1 }
   0x5   :  { %p97_p2 = pnand %p95_p1, %p92_p0 }
   0x7   :  { %100 = shalt.err (!%p97_p2)
}
   0x8   :  { %s101_s18 = scalar_lea.vmem %s19_s10, 256  ;;  %p106_p4 = scmp.lt.s32.totalorder %s19_s10, %s19_s10 }
   0x9   :  { %p102_p3 = scmp.ne.s32.totalorder %s19_s10, %s101_s18  ;;  %p107_p5 = scmp.lt.s32.totalorder %s101_s18, %s101_s18 }
   0xb   :  { %p108_p6 = por %p107_p5, %p106_p4 }
   0xd   :  { %p109_p7 = pnand %p108_p6, %p102_p3 }
   0xf   :  { %112 = shalt.err (!%p109_p7)
}
  0x10   :  { %21 = dma.hbm_to_vmem [thread:$0]  %s184_s1, 256, %s19_s10, [#allocation4]  }
  0x11   :  { %135 = dma.done.wait [#allocation4], 256  }
  0x12   :  { %136 = vsyncadd [#allocation4], 4294967040  ;;  %v32_v0 = vlaneseq  ;;  %v47_v7 = vstv %s183_s0  ;;  %v25_v18 = vld [vmem:[#allocation3] sm:$0xff]  ;;  %v26_v20 = vld [vmem:[#allocation3 + $0x8] sm:$0xff]  ;;  %s140_s0 = smov [#allocation6]  }
  0x13   :  { %v27_v24 = vmax.f32 %v25_v18, 0.0  ;;  %v28_v25 = vmax.f32 %v26_v20, 0.0  ;;  %s80_s1 = sshll.u32 %s140_s0, 4  ;;  %s81_s1 = int_to_ptr.vmem [resolvable:$true] %s80_s1 }
  0x14   :  { %v33_v1 = vshrl.u32 %v32_v0, 7  ;;  %v37_v2 = vand.u32 127, %v32_v0  ;;  %s113_s23 = scalar_lea.vmem %s81_s1, 256  ;;  %p118_p9 = scmp.lt.s32.totalorder %s81_s1, %s81_s1 }
  0x15   :  { %v68_v30 = vmul.f32 2.0, %v27_v24  ;;  %v69_v31 = vmul.f32 2.0, %v28_v25  ;;  %p114_p8 = scmp.ne.s32.totalorder %s81_s1, %s113_s23  ;;  %p119_p10 = scmp.lt.s32.totalorder %s113_s23, %s113_s23 }
  0x16   :  { %v42_v3 = vmul.u32 256, %v33_v1  ;;  %v38_v4 = vadd.s32 128, %v37_v2 }
  0x17   :  { %p120_p11 = por %p119_p10, %p118_p9 }
  0x18   :  { %v43_v5 = vadd.s32 %v42_v3, %v37_v2  ;;  %v44_v6 = vadd.s32 %v42_v3, %v38_v4 }
  0x19   :  { %p121_p12 = pnand %p120_p11, %p114_p8 }
  0x1a   :  { %v45_v8 = vmul.u32 2654435761, %v43_v5  ;;  %v46_v9 = vmul.u32 2654435761, %v44_v6 }
  0x1c   :  { %v48_v10 = vadd.s32 %v47_v7, %v45_v8  ;;  %v49_v11 = vadd.s32 %v47_v7, %v46_v9 }
  0x1e   :  { %v50_v12 = vshrl.u32 %v48_v10, 16  ;;  %v51_v13 = vshrl.u32 %v49_v11, 16 }
  0x20   :  { %v52_v14 = vxor.u32 %v50_v12, %v48_v10  ;;  %v53_v15 = vxor.u32 %v51_v13, %v49_v11 }
  0x22   :  { %v54_v16 = vmul.u32 2146121005, %v52_v14  ;;  %v55_v17 = vmul.u32 2146121005, %v53_v15 }
  0x24   :  { %v56_v19 = vshrl.u32 %v54_v16, 15  ;;  %v57_v21 = vshrl.u32 %v55_v17, 15 }
  0x26   :  { %v58_v22 = vxor.u32 %v56_v19, %v54_v16  ;;  %v59_v23 = vxor.u32 %v57_v21, %v55_v17 }
  0x28   :  { %v60_v26 = vmul.u32 2221713035, %v58_v22  ;;  %v61_v27 = vmul.u32 2221713035, %v59_v23 }
  0x2a   :  { %v62_v28 = vshrl.u32 %v60_v26, 16  ;;  %v63_v29 = vshrl.u32 %v61_v27, 16 }
  0x2c   :  { %v64_v32 = vxor.u32 %v62_v28, %v60_v26  ;;  %v65_v33 = vxor.u32 %v63_v29, %v61_v27 }
  0x2e   :  { %vm66_vm0 = vcmp.ge.u32.totalorder %v64_v32, 2147483648  ;;  %vm67_vm1 = vcmp.ge.u32.totalorder %v65_v33, 2147483648 }
  0x2f   :  { %v70_v34 = vsel %vm66_vm0, %v68_v30, 0.0  ;;  %v71_v35 = vsel %vm67_vm1, %v69_v31, 0.0 }
  0x30   :  { %72 = vst [vmem:[#allocation6] sm:$0xff] %v70_v34  ;;  %73 = vst [vmem:[#allocation6 + $0x8] sm:$0xff] %v71_v35 }
  0x31   :  { %124 = shalt.err (!%p121_p12)
}
  0x32   :  { %s125_s26 = scalar_lea.hbm %s185_s2, 256 }
  0x33   :  { %p126_p13 = scmp.ne.s32.totalorder %s185_s2, %s125_s26  ;;  %p129_p0 = scmp.lt.u32.totalorder %s125_s26, %s185_s2 }
  0x35   :  { %p131_p1 = pnand %p129_p0, %p126_p13 }
  0x37   :  { %134 = shalt.err (!%p131_p1)
}
  0x38   :  { %83 = dma.vmem_to_hbm [thread:$0]  %s81_s1, 256, %s185_s2, [#allocation5]  }
  0x39   :  { %137 = dma.done.wait [#allocation5], 256  }
  0x3a   :  { %138 = vsyncadd [#allocation5], 4294967040 }
  0x3b   :  { %87 = vsyncpa [#allocation4], 1 }
  0x3c   :  { %88 = vsyncpa [#allocation5], 1 }

</bundles_post_ra>
